<compile_context>
chip_gen: v5e
topology: v5e:2x2
jax: 0.10.0
libtpu: 0.0.40
codegen_flags: <defaults>
</compile_context>

<pallas_src>
import functools
import math

import jax
import jax.numpy as jnp
from jax import lax
from jax.experimental import pallas as pl
from jax.experimental.pallas import tpu as pltpu

LN_EPS = 1e-5  # torch.nn.LayerNorm default


def _round_up(x, m):
    return ((x + m - 1) // m) * m


def _ln_kernel(x_ref, g_ref, b_ref, m_ref, o_ref, *, inv_c):
    """LayerNorm over C-lane groups of a lane-packed (tile, G*C) block.

    Group sums / sums-of-squares go through the MXU with a block-diagonal
    ones matrix, which also broadcasts the statistic back across each group's
    C lanes, so no XLU reduction or separate broadcast pass is needed.
    """
    x = x_ref[...].astype(jnp.float32)        # (T, GC)
    g = g_ref[...].astype(jnp.float32)        # (1, GC)
    b = b_ref[...].astype(jnp.float32)        # (1, GC)
    m = m_ref[...]                            # (GC, GC) block-diagonal ones, f32

    mean = jnp.dot(x, m, precision=lax.Precision.HIGHEST,
                   preferred_element_type=jnp.float32) * inv_c
    ex2 = jnp.dot(x * x, m, precision=lax.Precision.HIGHEST,
                  preferred_element_type=jnp.float32) * inv_c
    var = jnp.maximum(ex2 - mean * mean, 0.0)   # single-pass variance
    inv = lax.rsqrt(var + LN_EPS)
    o_ref[...] = ((x - mean) * inv * g + b).astype(o_ref.dtype)


def layernorm_pallas(x2d, gamma, beta, *, tile_rows=2048):
    """x2d: (rows, C); gamma/beta: (C,).  Returns LayerNorm(x2d) over axis -1."""
    rows, c = x2d.shape

    # Lane-pack G channel rows per packed row -> last dim a multiple of 128
    # lanes (exactly 128 for C=32).  Fall back to no packing for awkward C.
    g_pack = 128 // math.gcd(c, 128)
    if g_pack * c > 512:
        g_pack = 1
    gc = g_pack * c

    # Pad rows so (rows / g_pack) is a multiple of the (8-aligned) row tile.
    packed_rows0 = _round_up(rows, g_pack) // g_pack
    tile = tile_rows if packed_rows0 >= tile_rows else _round_up(packed_rows0, 8)
    packed_rows = _round_up(packed_rows0, tile)
    rows_padded = packed_rows * g_pack
    if rows_padded != rows:
        x2d = jnp.pad(x2d, ((0, rows_padded - rows), (0, 0)))

    xp = x2d.reshape(packed_rows, gc)                      # lane-dense slab
    gamma_p = jnp.tile(gamma.reshape(1, c), (1, g_pack))   # (1, GC)
    beta_p = jnp.tile(beta.reshape(1, c), (1, g_pack))     # (1, GC)

    # Block-diagonal ones: dot(x, M) = per-group sum, broadcast over the group.
    gid = jnp.arange(gc, dtype=jnp.int32) // c
    mat = (gid[:, None] == gid[None, :]).astype(jnp.float32)

    grid = (packed_rows // tile,)
    kernel = functools.partial(_ln_kernel, inv_c=1.0 / float(c))
    yp = pl.pallas_call(
        kernel,
        out_shape=jax.ShapeDtypeStruct((packed_rows, gc), x2d.dtype),
        grid_spec=pltpu.PrefetchScalarGridSpec(
            num_scalar_prefetch=0,
            grid=grid,
            in_specs=[
                pl.BlockSpec((tile, gc), lambda i: (i, 0)),
                pl.BlockSpec((1, gc), lambda i: (0, 0)),
                pl.BlockSpec((1, gc), lambda i: (0, 0)),
                pl.BlockSpec((gc, gc), lambda i: (0, 0)),
            ],
            out_specs=pl.BlockSpec((tile, gc), lambda i: (i, 0)),
        ),
        compiler_params=pltpu.CompilerParams(
            dimension_semantics=("parallel",),   # row grid shards across v7x TCs
        ),
    )(xp, gamma_p, beta_p, mat)

    y = yp.reshape(rows_padded, c)
    if rows_padded != rows:
        y = y[:rows]
    return y


def final_patch_expand_x4_1(x, gamma, beta, *, input_resolution, dim_scale=1,
                            tile_rows=2048):
    """Forward pass of FinalPatchExpand_X4_1.

    x: (B, H*W, C) -> (B, (H*p)*(W*p), C // p^2) with p = dim_scale.
    For the module default dim_scale=1 this is exactly LayerNorm over C.
    """
    H, W = input_resolution
    B, L, C = x.shape
    assert L == H * W, "input feature has wrong size"
    p = dim_scale
    c_out = C // (p * p)

    if p == 1:
        xr = x  # rearrange is the identity; avoid an extra HBM pass
    else:
        # TODO(synk): fold this pixel-shuffle into the kernel's BlockSpec
        # index_map to avoid an extra HBM read+write pass (only hit for p>1).
        xr = x.reshape(B, H, W, p, p, c_out)
        xr = jnp.transpose(xr, (0, 1, 3, 2, 4, 5))       # b h p1 w p2 c
        xr = xr.reshape(B, (H * p) * (W * p), c_out)

    rows = B * (H * p) * (W * p)
    x2d = xr.reshape(rows, c_out)
    y2d = layernorm_pallas(x2d, gamma, beta, tile_rows=tile_rows)
    return y2d.reshape(B, (H * p) * (W * p), c_out)


def _reference(x, gamma, beta, *, input_resolution, dim_scale=1):
    """Pure-JAX reference for correctness checking."""
    H, W = input_resolution
    B, L, C = x.shape
    p = dim_scale
    c_out = C // (p * p)
    xr = x.reshape(B, H, W, p, p, c_out)
    xr = jnp.transpose(xr, (0, 1, 3, 2, 4, 5)).reshape(B, (H * p) * (W * p), c_out)
    xf = xr.astype(jnp.float32)
    mean = jnp.mean(xf, axis=-1, keepdims=True)
    var = jnp.mean((xf - mean) ** 2, axis=-1, keepdims=True)
    y = (xf - mean) * lax.rsqrt(var + LN_EPS) * gamma + beta
    return y.astype(x.dtype)


if __name__ == "__main__":
    # Small shapes consistent with the module: B=2, input_resolution=(8,8),
    # C=dim=32, dim_scale=1 -> x: (2, 64, 32).
    B, H, W, C = 2, 8, 8, 32
    dim_scale = 1

    key = jax.random.PRNGKey(0)
    kx, kg, kb = jax.random.split(key, 3)
    x = jax.random.normal(kx, (B, H * W, C), dtype=jnp.float32)
    gamma = 1.0 + 0.1 * jax.random.normal(kg, (C,), dtype=jnp.float32)
    beta = 0.1 * jax.random.normal(kb, (C,), dtype=jnp.float32)

    fwd = functools.partial(final_patch_expand_x4_1,
                            input_resolution=(H, W), dim_scale=dim_scale)
    y = jax.block_until_ready(fwd(x, gamma, beta))

    y_ref = _reference(x, gamma, beta, input_resolution=(H, W),
                       dim_scale=dim_scale)
    assert y.shape == (B, H * W, C)   # holds for dim_scale == 1
    assert jnp.allclose(y, y_ref, atol=1e-5, rtol=1e-5), "mismatch vs reference"
    print("KERNEL_OK")
</pallas_src>

<mosaic_0001>
module attributes {stable_mosaic.version = 11 : i64} {
  func.func @_ln_kernel(%arg0: i32, %arg1: memref<32x128xf32, #tpu.memory_space<vmem>>, %arg2: memref<1x128xf32, #tpu.memory_space<vmem>>, %arg3: memref<1x128xf32, #tpu.memory_space<vmem>>, %arg4: memref<128x128xf32, #tpu.memory_space<vmem>>, %arg5: memref<32x128xf32, #tpu.memory_space<vmem>>) attributes {dimension_semantics = [#tpu.dimension_semantics<parallel>], iteration_bounds = array<i64: 1>, scalar_prefetch = 0 : i64, scratch_operands = 0 : i64, tpu.core_type = #tpu.core_type<tc>, window_params = [{transform_indices = @transform_0, window_bounds = array<i64: 32, 128>}, {pipeline_mode = #tpu.pipeline_mode<synchronous>, transform_indices = @transform_1, window_bounds = array<i64: 1, 128>}, {pipeline_mode = #tpu.pipeline_mode<synchronous>, transform_indices = @transform_2, window_bounds = array<i64: 1, 128>}, {pipeline_mode = #tpu.pipeline_mode<synchronous>, transform_indices = @transform_3, window_bounds = array<i64: 128, 128>}, {transform_indices = @transform_4, window_bounds = array<i64: 32, 128>}]} {
    %c0 = arith.constant 0 : index
    %c0_0 = arith.constant 0 : index
    %0 = vector.load %arg1[%c0, %c0_0] : memref<32x128xf32, #tpu.memory_space<vmem>>, vector<32x128xf32>
    %c0_1 = arith.constant 0 : index
    %c0_2 = arith.constant 0 : index
    %1 = vector.load %arg2[%c0_1, %c0_2] : memref<1x128xf32, #tpu.memory_space<vmem>>, vector<1x128xf32>
    %c0_3 = arith.constant 0 : index
    %c0_4 = arith.constant 0 : index
    %2 = vector.load %arg3[%c0_3, %c0_4] : memref<1x128xf32, #tpu.memory_space<vmem>>, vector<1x128xf32>
    %c0_5 = arith.constant 0 : index
    %c0_6 = arith.constant 0 : index
    %3 = vector.load %arg4[%c0_5, %c0_6] : memref<128x128xf32, #tpu.memory_space<vmem>>, vector<128x128xf32>
    %cst = arith.constant dense<0.000000e+00> : vector<32x128xf32>
    %4 = tpu.matmul %0, %3, %cst {dimension_numbers = #tpu.dot_dimension_numbers<[1], [0], [0], [1], [0, 0, 1, 1], [], []>, precision = #tpu.contract_precision<fp32>} : vector<32x128xf32>, vector<128x128xf32>, vector<32x128xf32> -> vector<32x128xf32>
    %cst_7 = arith.constant 3.125000e-02 : f32
    %5 = vector.broadcast %cst_7 : f32 to vector<32x128xf32>
    %6 = arith.mulf %4, %5 : vector<32x128xf32>
    %7 = arith.mulf %0, %0 : vector<32x128xf32>
    %cst_8 = arith.constant dense<0.000000e+00> : vector<32x128xf32>
    %8 = tpu.matmul %7, %3, %cst_8 {dimension_numbers = #tpu.dot_dimension_numbers<[1], [0], [0], [1], [0, 0, 1, 1], [], []>, precision = #tpu.contract_precision<fp32>} : vector<32x128xf32>, vector<128x128xf32>, vector<32x128xf32> -> vector<32x128xf32>
    %cst_9 = arith.constant 3.125000e-02 : f32
    %9 = vector.broadcast %cst_9 : f32 to vector<32x128xf32>
    %10 = arith.mulf %8, %9 : vector<32x128xf32>
    %11 = arith.mulf %6, %6 : vector<32x128xf32>
    %12 = arith.subf %10, %11 : vector<32x128xf32>
    %cst_10 = arith.constant 0.000000e+00 : f32
    %13 = vector.broadcast %cst_10 : f32 to vector<32x128xf32>
    %14 = arith.maximumf %12, %13 : vector<32x128xf32>
    %cst_11 = arith.constant 9.99999974E-6 : f32
    %15 = vector.broadcast %cst_11 : f32 to vector<32x128xf32>
    %16 = arith.addf %14, %15 : vector<32x128xf32>
    %17 = math.rsqrt %16 : vector<32x128xf32>
    %18 = arith.subf %0, %6 : vector<32x128xf32>
    %19 = arith.mulf %18, %17 : vector<32x128xf32>
    %20 = vector.broadcast %1 : vector<1x128xf32> to vector<32x128xf32>
    %21 = arith.mulf %19, %20 : vector<32x128xf32>
    %22 = vector.broadcast %2 : vector<1x128xf32> to vector<32x128xf32>
    %23 = arith.addf %21, %22 : vector<32x128xf32>
    %c0_12 = arith.constant 0 : index
    %c0_13 = arith.constant 0 : index
    %24 = vector.load %arg5[%c0_12, %c0_13] : memref<32x128xf32, #tpu.memory_space<vmem>>, vector<32x128xf32>
    tpu.vector_store %arg5[%c0_12, %c0_13], %23 {strides = array<i32>} : memref<32x128xf32, #tpu.memory_space<vmem>>, vector<32x128xf32>,
    return
  }
  func.func @transform_0(%arg0: i32) -> (i32, i32) {
    %c0_i32 = arith.constant 0 : i32
    %c0_i32_0 = arith.constant 0 : i32
    return %arg0, %c0_i32 : i32, i32
  }
  func.func @transform_1(%arg0: i32) -> (i32, i32) {
    %c0_i32 = arith.constant 0 : i32
    %c0_i32_0 = arith.constant 0 : i32
    %c0_i32_1 = arith.constant 0 : i32
    return %c0_i32, %c0_i32_0 : i32, i32
  }
  func.func @transform_2(%arg0: i32) -> (i32, i32) {
    %c0_i32 = arith.constant 0 : i32
    %c0_i32_0 = arith.constant 0 : i32
    %c0_i32_1 = arith.constant 0 : i32
    return %c0_i32, %c0_i32_0 : i32, i32
  }
  func.func @transform_3(%arg0: i32) -> (i32, i32) {
    %c0_i32 = arith.constant 0 : i32
    %c0_i32_0 = arith.constant 0 : i32
    %c0_i32_1 = arith.constant 0 : i32
    return %c0_i32, %c0_i32_0 : i32, i32
  }
  func.func @transform_4(%arg0: i32) -> (i32, i32) {
    %c0_i32 = arith.constant 0 : i32
    %c0_i32_0 = arith.constant 0 : i32
    return %arg0, %c0_i32 : i32, i32
  }
}

</mosaic_0001>

<bundles_post_ra>
// kernel: tpu_custom_call.1
= control target key start
LH: loop header
LB: loop body
LE: loop exit
PB: predicated region body
PF: predicated region fallthrough
CT: control target
= control target key end

     0   :  { %9 = vsyncpa [#allocation3], 0  ;;  %s1771_s0 = inlined_call_operand.hbm [shape: f32[32,128], index: 0, kind: input, shape index: {}]   ;;  %s1772_s1 = inlined_call_operand.hbm [shape: f32[1,128], index: 1, kind: input, shape index: {}]   ;;  %s1773_s2 = inlined_call_operand.vmem [shape: f32[1,128], index: 2, kind: input, shape index: {}]   ;;  %s1774_s3 = inlined_call_operand.hbm [shape: f32[128,128], index: 3, kind: input, shape index: {}]   ;;  %s1775_s4 = inlined_call_operand.hbm [shape: f32[32,128], index: 4, kind: output, shape index: {}]  }
   0x1   :  { %10 = vsyncpa [#allocation6], 0  ;;  %s30_s17 = sshll.u32 %s1772_s1, 4  ;;  %s31_s17 = int_to_ptr.hbm [resolvable:$true] %s30_s17 }
   0x2   :  { %11 = vsyncpa [#allocation4], 0  ;;  %s1185_s18 = smov [#allocation5]   ;;  %s16_s22 = sshll.u32 %s1771_s0, 4  ;;  %s17_s22 = int_to_ptr.hbm [resolvable:$true] %s16_s22 }
   0x3   :  { %s32_s19 = sshll.u32 %s1185_s18, 4  ;;  %s1186_s23 = smov [#allocation2]   ;;  %s33_s19 = int_to_ptr.vmem [resolvable:$true] %s32_s19 }
   0x4   :  { %35 = dma.hbm_to_vmem [thread:$0]  %s31_s17, 16, %s33_s19, [#allocation6]  }
   0x5   :  { %s18_s24 = sshll.u32 %s1186_s23, 4  ;;  %s1187_s25 = smov 128   ;;  %s19_s24 = int_to_ptr.vmem [resolvable:$true] %s18_s24 }
   0x6   :  { %s1188_s26 = smov 8   ;;  %s42_s28 = sshll.u32 %s1774_s3, 4  ;;  %s43_s28 = int_to_ptr.hbm [resolvable:$true] %s42_s28 }
   0x7   :  { %24 = dma.hbm_to_vmem [thread:$0]  %s17_s22, 512, %s19_s24, [#allocation3], %s1187_s25, %s1187_s25, %s1188_s26  }
   0x8   :  { %s1189_s29 = smov [#allocation7]  }
   0x9   :  { %s44_s30 = sshll.u32 %s1189_s29, 4  ;;  %s45_s30 = int_to_ptr.vmem [resolvable:$true] %s44_s30 }
   0xa   :  { %50 = dma.hbm_to_vmem [thread:$0]  %s43_s28, 2048, %s45_s30, [#allocation6], %s1187_s25, %s1187_s25, %s1188_s26  }
   0xb   :  { %1179 = dma.done.wait [#allocation3], 512  }
   0xc   :  { %1180 = vsyncadd [#allocation3], 4294966784 }
   0xd   :  { %1181 = dma.done.wait [#allocation6], 2064  }
   0xe   :  { %1182 = vsyncadd [#allocation6], 4294965232  ;;  %v84_v0 = vld [vmem:[#allocation7 + $0x78] sm:$0xff]  ;;  %v83_v1 = vld [vmem:[#allocation7 + $0x70] sm:$0xff]  ;;  %s1053_s8 = sshll.u32 %s1775_s4, 4  ;;  %s1054_s8 = int_to_ptr.hbm [resolvable:$true] %s1053_s8 }
   0xf   :  { %v82_v2 = vld [vmem:[#allocation7 + $0x68] sm:$0xff]  ;;  %v1231_v3 = vand.u32 4294901760, %v84_v0  ;;  %v1233_v4 = vand.u32 4294901760, %v83_v1  ;;  %v81_v6 = vld [vmem:[#allocation7 + $0x60] sm:$0xff]  ;;  %v80_v7 = vld [vmem:[#allocation7 + $0x58] sm:$0xff] }
  0x10   :  { %v1235_v5 = vand.u32 4294901760, %v82_v2  ;;  %v79_v8 = vld [vmem:[#allocation7 + $0x50] sm:$0xff]  ;;  %v1237_v9 = vand.u32 4294901760, %v81_v6  ;;  %v1239_v10 = vand.u32 4294901760, %v80_v7  ;;  %v78_v12 = vld [vmem:[#allocation7 + $0x48] sm:$0xff]  ;;  %v77_v13 = vld [vmem:[#allocation7 + $0x40] sm:$0xff] }
  0x11   :  { %v1241_v11 = vand.u32 4294901760, %v79_v8  ;;  %86 = vmatpush.msra.mxu0 %v1231_v3  ;;  %v1245_v14 = vsub.f32 %v84_v0, %v1231_v3  ;;  %333 = vmatpush.msra.mxu3 %v1231_v3  ;;  %v1249_v15 = vsub.f32 %v83_v1, %v1233_v4  ;;  %v1254_v17 = vand.u32 4294901760, %v78_v12  ;;  %v76_v18 = vld [vmem:[#allocation7 + $0x38] sm:$0xff]  ;;  %v75_v29 = vld [vmem:[#allocation7 + $0x30] sm:$0xff]  ;;  %v74_v36 = vld [vmem:[#allocation7 + $0x28] sm:$0xff] }
  0x12   :  { %v1252_v16 = vsub.f32 %v82_v2, %v1235_v5  ;;  %v1257_v19 = vsub.f32 %v81_v6, %v1237_v9  ;;  %v1260_v20 = vsub.f32 %v80_v7, %v1239_v10  ;;  %v1262_v21 = vand.u32 4294901760, %v77_v13  ;;  %v73_v43 = vld [vmem:[#allocation7 + $0x20] sm:$0xff]  ;;  %v72_v49 = vld [vmem:[#allocation7 + $0x18] sm:$0xff]  ;;  %v71_v55 = vld [vmem:[#allocation7 + $0x10] sm:$0xff] }
  0x13   :  { %1791 = vst [vmem:[#allocation12_spill] sm:$0xff] %v1245_v14  ;;  %v1265_v22 = vsub.f32 %v79_v8, %v1241_v11  ;;  %88 = vmatpush.msra.mxu0 %v1233_v4  ;;  %265 = vmatpush.msra.mxu2 %v1245_v14  ;;  %v1270_v23 = vand.u32 4294901760, %v1245_v14  ;;  %v1273_v24 = vand.u32 4294901760, %v1249_v15  ;;  %v1282_v27 = vand.u32 4294901760, %v76_v18  ;;  %v1353_v56 = vld [vmem:[#allocation2] sm:$0xff]  ;;  %v70_v62 = vld [vmem:[#allocation7 + $0x8] sm:$0xff] }
  0x14   :  { %1792 = vst [vmem:[#allocation13_spill] sm:$0xff] %v1249_v15  ;;  %v1276_v25 = vand.u32 4294901760, %v1252_v16  ;;  %335 = vmatpush.msra.mxu3 %v1233_v4  ;;  %v1280_v26 = vand.u32 4294901760, %v1257_v19  ;;  %v1285_v28 = vsub.f32 %v78_v12, %v1254_v17  ;;  %v1296_v33 = vand.u32 4294901760, %v1260_v20  ;;  %v69_v8 = vld [vmem:[#allocation7] sm:$0xff] }
  0x15   :  { %1793 = vst [vmem:[#allocation14_spill] sm:$0xff] %v1252_v16  ;;  %90 = vmatpush.msra.mxu0 %v1235_v5  ;;  %268 = vmatpush.msra.mxu2 %v1249_v15  ;;  %v153_v30 = vsub.f32 %v1245_v14, %v1270_v23  ;;  %v159_v31 = vsub.f32 %v1249_v15, %v1273_v24  ;;  %v1300_v34 = vand.u32 4294901760, %v1265_v22  ;;  %v1313_v40 = vand.u32 4294901760, %v75_v29 }
  0x16   :  { %1794 = vst [vmem:[#allocation15_spill] sm:$0xff] %v1257_v19  ;;  %v165_v32 = vsub.f32 %v1252_v16, %v1276_v25  ;;  %337 = vmatpush.msra.mxu3 %v1235_v5  ;;  %v1303_v35 = vsub.f32 %v77_v13, %v1262_v21  ;;  %v171_v39 = vsub.f32 %v1257_v19, %v1280_v26  ;;  %v1317_v41 = vand.u32 4294901760, %v1285_v28 }
  0x17   :  { %1795 = vst [vmem:[#allocation16_spill] sm:$0xff] %v1260_v20  ;;  %92 = vmatpush.msra.mxu0 %v1237_v9  ;;  %v1306_v37 = vand.u32 4294901760, %v153_v30  ;;  %271 = vmatpush.msra.mxu2 %v1252_v16  ;;  %v1309_v38 = vand.u32 4294901760, %v159_v31  ;;  %v1320_v42 = vsub.f32 %v76_v18, %v1282_v27  ;;  %v177_v45 = vsub.f32 %v1260_v20, %v1296_v33  ;;  %v1407_v31 = vld [vmem:[#allocation2 + $0x8] sm:$0xff] }
  0x18   :  { %1796 = vst [vmem:[#allocation17_spill] sm:$0xff] %v1265_v22  ;;  %339 = vmatpush.msra.mxu3 %v1237_v9  ;;  %v1324_v44 = vand.u32 4294901760, %v165_v32  ;;  %v1328_v46 = vand.u32 4294901760, %v74_v36  ;;  %v183_v47 = vsub.f32 %v1265_v22, %v1300_v34  ;;  %v1335_v48 = vand.u32 4294901760, %v1303_v35 }
  0x19   :  { %1797 = vst [vmem:[#allocation18_spill] sm:$0xff] %v1285_v28  ;;  %94 = vmatpush.msra.mxu0 %v1239_v10  ;;  %155 = vmatpush.msra.mxu1 %v1306_v37  ;;  %v1339_v50 = vand.u32 4294901760, %v171_v39  ;;  %v1341_v51 = vand.u32 4294901760, %v73_v43  ;;  %v1344_v52 = vsub.f32 %v75_v29, %v1313_v40  ;;  %v189_v53 = vsub.f32 %v1285_v28, %v1317_v41 }
  0x1a   :  { %1798 = vst [vmem:[#allocation19_spill] sm:$0xff] %v1303_v35  ;;  %274 = vmatpush.msra.mxu2 %v1257_v19  ;;  %341 = vmatpush.msra.mxu3 %v1239_v10  ;;  %v1351_v54 = vand.u32 4294901760, %v1320_v42  ;;  %v1357_v57 = vand.u32 4294901760, %v177_v45  ;;  %v1359_v58 = vand.u32 4294901760, %v72_v49  ;;  %v1362_v59 = vsub.f32 %v74_v36, %v1328_v46 }
  0x1b   :  { %1799 = vst [vmem:[#allocation20_spill] sm:$0xff] %v1320_v42  ;;  %96 = vmatpush.msra.mxu0 %v1241_v11  ;;  %161 = vmatpush.msra.mxu1 %v1309_v38  ;;  %v1366_v60 = vand.u32 4294901760, %v183_v47  ;;  %v195_v61 = vsub.f32 %v1303_v35, %v1335_v48  ;;  %v1372_v63 = vand.u32 4294901760, %v71_v55  ;;  %v1375_v0 = vand.u32 4294901760, %v1344_v52 }
  0x1c   :  { %1800 = vst [vmem:[#allocation21_spill] sm:$0xff] %v1344_v52  ;;  %277 = vmatpush.msra.mxu2 %v1260_v20  ;;  %343 = vmatpush.msra.mxu3 %v1241_v11  ;;  %v1378_v1 = vsub.f32 %v73_v43, %v1341_v51  ;;  %v1381_v2 = vand.u32 4294901760, %v1353_v56  ;;  %v1385_v6 = vand.u32 4294901760, %v189_v53  ;;  %v201_v7 = vsub.f32 %v1320_v42, %v1351_v54 }
  0x1d   :  { %98 = vmatpush.msra.mxu0 %v1254_v17  ;;  %167 = vmatpush.msra.mxu1 %v1324_v44  ;;  %1801 = vst [vmem:[#allocation22_spill] sm:$0xff] %v1362_v59  ;;  %v1391_v12 = vand.u32 4294901760, %v70_v62  ;;  %v1394_v13 = vand.u32 4294901760, %v1362_v59  ;;  %v1397_v18 = vsub.f32 %v72_v49, %v1359_v58  ;;  %v1405_v30 = vand.u32 4294901760, %v195_v61 }
  0x1e   :  { %280 = vmatpush.msra.mxu2 %v1265_v22  ;;  %345 = vmatpush.msra.mxu3 %v1254_v17  ;;  %1802 = vst [vmem:[#allocation23_spill] sm:$0xff] %v1378_v1  ;;  %v1401_v29 = vsub.f32 %v1353_v56, %v1381_v2  ;;  %v207_v32 = vsub.f32 %v1344_v52, %v1375_v0  ;;  %v1413_v36 = vand.u32 4294901760, %v69_v8  ;;  %v1416_v39 = vand.u32 4294901760, %v1378_v1 }
  0x1f   :  { %100 = vmatpush.msra.mxu0 %v1262_v21  ;;  %173 = vmatpush.msra.mxu1 %v1339_v50  ;;  %1803 = vst [vmem:[#allocation24_spill] sm:$0xff] %v1397_v18  ;;  %v1419_v43 = vsub.f32 %v71_v55, %v1372_v63  ;;  %v1423_v45 = vand.u32 4294901760, %v201_v7  ;;  %v213_v49 = vsub.f32 %v1362_v59, %v1394_v13  ;;  %v1431_v53 = vand.u32 4294901760, %v1397_v18 }
  0x20   :  { %283 = vmatpush.msra.mxu2 %v1285_v28  ;;  %347 = vmatpush.msra.mxu3 %v1262_v21  ;;  %v119_v47 = vand.u32 4294901760, %v1401_v29  ;;  %v1434_v55 = vsub.f32 %v70_v62, %v1391_v12  ;;  %v1437_v61 = vand.u32 4294901760, %v1407_v31  ;;  %v1443_v7 = vand.u32 4294901760, %v207_v32 }
  0x21   :  { %102 = vmatpush.msra.mxu0 %v1282_v27  ;;  %179 = vmatpush.msra.mxu1 %v1357_v57  ;;  %1804 = vst [vmem:[#allocation25_spill] sm:$0xff] %v1419_v43  ;;  %v1451_v62 = vsub.f32 %v69_v8, %v1413_v36  ;;  %v1458_v32 = vand.u32 4294901760, %v213_v49  ;;  %v225_v28 = vsub.f32 %v1397_v18, %v1431_v53 }
  0x22   :  { %286 = vmatpush.msra.mxu2 %v1303_v35  ;;  %349 = vmatpush.msra.mxu3 %v1282_v27  ;;  %v1448_v35 = vand.u32 4294901760, %v1419_v43  ;;  %v1463_v22 = vand.u32 4294901760, %v1434_v55  ;;  %v1467_v8 = vsub.f32 %v1407_v31, %v1437_v61 }
  0x23   :  { %104 = vmatpush.msra.mxu0 %v1313_v40  ;;  %185 = vmatpush.msra.mxu1 %v1366_v60  ;;  %1805 = vst [vmem:[#allocation26_spill] sm:$0xff] %v1451_v62  ;;  %v1478_v20 = vand.u32 4294901760, %v1451_v62  ;;  %v1486_v16 = vand.u32 4294901760, %v225_v28 }
  0x24   :  { %289 = vmatpush.msra.mxu2 %v1320_v42  ;;  %351 = vmatpush.msra.mxu3 %v1313_v40  ;;  %v219_v42 = vsub.f32 %v1378_v1, %v1416_v39  ;;  %v127_v15 = vand.u32 4294901760, %v1467_v8 }
  0x25   :  { %106 = vmatpush.msra.mxu0 %v1328_v46  ;;  %191 = vmatpush.msra.mxu1 %v1385_v6 }
  0x26   :  { %292 = vmatpush.msra.mxu2 %v1344_v52  ;;  %353 = vmatpush.msra.mxu3 %v1328_v46  ;;  %v120_v52 = vsub.f32 %v1401_v29, %v119_v47  ;;  %v1473_v49 = vand.u32 4294901760, %v219_v42  ;;  %v237_v42 = vsub.f32 %v1434_v55, %v1463_v22  ;;  %v128_v14 = vsub.f32 %v1467_v8, %v127_v15 }
  0x27   :  { %108 = vmatpush.msra.mxu0 %v1341_v51  ;;  %197 = vmatpush.msra.mxu1 %v1405_v30 }
  0x28   :  { %295 = vmatpush.msra.mxu2 %v1362_v59  ;;  %355 = vmatpush.msra.mxu3 %v1341_v51  ;;  %v231_v59 = vsub.f32 %v1419_v43, %v1448_v35  ;;  %v121_v19 = vand.u32 4294901760, %v120_v52 }
  0x29   :  { %110 = vmatpush.msra.mxu0 %v1359_v58  ;;  %203 = vmatpush.msra.mxu1 %v1423_v45 }
  0x2a   :  { %298 = vmatpush.msra.mxu2 %v1378_v1  ;;  %357 = vmatpush.msra.mxu3 %v1359_v58  ;;  %v1482_v1 = vld [vmem:[#allocation2 + $0x10] sm:$0xff]  ;;  %v1495_v52 = vand.u32 4294901760, %v231_v59 }
  0x2b   :  { %112 = vmatpush.msra.mxu0 %v1372_v63  ;;  %209 = vmatpush.msra.mxu1 %v1443_v7  ;;  %v1500_v28 = vand.u32 4294901760, %v1482_v1 }
  0x2c   :  { %301 = vmatpush.msra.mxu2 %v1397_v18  ;;  %359 = vmatpush.msra.mxu3 %v1372_v63  ;;  %v243_v18 = vsub.f32 %v1451_v62, %v1478_v20 }
  0x2d   :  { %114 = vmatpush.msra.mxu0 %v1391_v12  ;;  %215 = vmatpush.msra.mxu1 %v1458_v32 }
  0x2e   :  { %304 = vmatpush.msra.mxu2 %v1419_v43  ;;  %361 = vmatpush.msra.mxu3 %v1391_v12  ;;  %v1505_v43 = vand.u32 4294901760, %v237_v42  ;;  %v1512_v59 = vand.u32 4294901760, %v243_v18  ;;  %v129_v42 = vand.u32 4294901760, %v128_v14 }
  0x2f   :  { %116 = vmatpush.msra.mxu0 %v1413_v36  ;;  %221 = vmatpush.msra.mxu1 %v1473_v49 }
  0x30   :  { %122 = vmatmul.f32.vlgmr.msra.gmra.mxu0 %v121_v19  ;;  %307 = vmatpush.msra.mxu2 %v1434_v55  ;;  %v134_v19 = vsub.f32 %v1482_v1, %v1500_v28 }
  0x31   :  { %227 = vmatpush.msra.mxu1 %v1486_v16  ;;  %392 = vmatpush.msrb.mxu0 %v1270_v23 }
  0x32   :  { %310 = vmatpush.msra.mxu2 %v1451_v62  ;;  %363 = vmatpush.msra.mxu3 %v1413_v36  ;;  %v1521_v62 = vld [vmem:[#allocation2 + $0x18] sm:$0xff]  ;;  %v135_v18 = vand.u32 4294901760, %v134_v19 }
  0x33   :  { %233 = vmatpush.msra.mxu1 %v1495_v52  ;;  %396 = vmatpush.msrb.mxu0 %v1273_v24  ;;  %v1529_v14 = vand.u32 4294901760, %v1521_v62 }
  0x34   :  { %313 = vmatmul.f32.vlgmr.msra.gmra.mxu2 %v1401_v29  ;;  %367 = vmatmul.f32.vlgmr.msra.gmra.mxu3 %v119_v47 }
  0x35   :  { %528 = vmatpush.msrb.mxu2 %v1231_v3  ;;  %239 = vmatpush.msra.mxu1 %v1505_v43 }
  0x36   :  { %400 = vmatpush.msrb.mxu0 %v1276_v25  ;;  %597 = vmatpush.msrb.mxu3 %v1306_v37  ;;  %v136_v37 = vsub.f32 %v134_v19, %v135_v18 }
  0x37   :  { %530 = vmatpush.msrb.mxu2 %v1233_v4  ;;  %245 = vmatpush.msra.mxu1 %v1512_v59 }
  0x38   :  { %404 = vmatpush.msrb.mxu0 %v1280_v26  ;;  %603 = vmatpush.msrb.mxu3 %v1309_v38  ;;  %v142_v38 = vsub.f32 %v1521_v62, %v1529_v14 }
  0x39   :  { %130 = vmatmul.f32.gmra.mxu0 %v129_v42  ;;  %247 = vmatmul.f32.vlgmr.msra.gmra.mxu1 %v1381_v2 }
  0x3a   :  { %471 = vmatpush.msrb.mxu1 %v1231_v3  ;;  %532 = vmatpush.msrb.mxu2 %v1235_v5 }
  0x3b   :  { %408 = vmatpush.msrb.mxu0 %v1296_v33  ;;  %609 = vmatpush.msrb.mxu3 %v1324_v44  ;;  %v137_v44 = vand.u32 4294901760, %v136_v37  ;;  %v1809_v37 = vld [vmem:[#allocation15_spill] sm:$0xff] }
  0x3c   :  { %473 = vmatpush.msrb.mxu1 %v1233_v4  ;;  %534 = vmatpush.msrb.mxu2 %v1237_v9 }
  0x3d   :  { %412 = vmatpush.msrb.mxu0 %v1300_v34  ;;  %615 = vmatpush.msrb.mxu3 %v1339_v50  ;;  %v143_v50 = vand.u32 4294901760, %v142_v38 }
  0x3e   :  { %318 = vmatmul.f32.gmra.mxu2 %v1467_v8  ;;  %373 = vmatmul.f32.gmra.mxu3 %v127_v15  ;;  %v523_v15 = vmul.f32 %v1353_v56, %v1353_v56 }
  0x3f   :  { %475 = vmatpush.msrb.mxu1 %v1235_v5  ;;  %536 = vmatpush.msrb.mxu2 %v1239_v10 }
  0x40   :  { %416 = vmatpush.msrb.mxu0 %v1317_v41  ;;  %621 = vmatpush.msrb.mxu3 %v1357_v57  ;;  %v144_v57 = vsub.f32 %v142_v38, %v143_v50 }
  0x41   :  { %477 = vmatpush.msrb.mxu1 %v1237_v9  ;;  %538 = vmatpush.msrb.mxu2 %v1241_v11 }
  0x42   :  { %420 = vmatpush.msrb.mxu0 %v1335_v48  ;;  %627 = vmatpush.msrb.mxu3 %v1366_v60  ;;  %v1561_v60 = vand.u32 4294901760, %v523_v15  ;;  %v145_v29 = vand.u32 4294901760, %v144_v57 }
  0x43   :  { %138 = vmatmul.f32.gmra.mxu0 %v137_v44  ;;  %251 = vmatmul.f32.gmra.mxu1 %v1437_v61 }
  0x44   :  { %479 = vmatpush.msrb.mxu1 %v1239_v10  ;;  %540 = vmatpush.msrb.mxu2 %v1254_v17 }
  0x45   :  { %424 = vmatpush.msrb.mxu0 %v1351_v54  ;;  %633 = vmatpush.msrb.mxu3 %v1385_v6  ;;  %v1572_v6 = vsub.f32 %v523_v15, %v1561_v60 }
  0x46   :  { %481 = vmatpush.msrb.mxu1 %v1241_v11  ;;  %542 = vmatpush.msrb.mxu2 %v1262_v21 }
  0x47   :  { %428 = vmatpush.msrb.mxu0 %v1375_v0  ;;  %639 = vmatpush.msrb.mxu3 %v1405_v30  ;;  %v524_v30 = vmul.f32 %v1407_v31, %v1407_v31 }
  0x48   :  { %323 = vmatmul.f32.gmra.mxu2 %v134_v19  ;;  %379 = vmatmul.f32.gmra.mxu3 %v135_v18  ;;  %v1808_v18 = vld [vmem:[#allocation14_spill] sm:$0xff] }
  0x49   :  { %483 = vmatpush.msrb.mxu1 %v1254_v17  ;;  %544 = vmatpush.msrb.mxu2 %v1282_v27  ;;  %v1586_v47 = vand.u32 4294901760, %v524_v30 }
  0x4a   :  { %432 = vmatpush.msrb.mxu0 %v1394_v13  ;;  %645 = vmatpush.msrb.mxu3 %v1423_v45  ;;  %v561_v45 = vand.u32 4294901760, %v1572_v6 }
  0x4b   :  { %485 = vmatpush.msrb.mxu1 %v1262_v21  ;;  %546 = vmatpush.msrb.mxu2 %v1313_v40 }
  0x4c   :  { %436 = vmatpush.msrb.mxu0 %v1416_v39  ;;  %651 = vmatpush.msrb.mxu3 %v1443_v7  ;;  %v562_v7 = vsub.f32 %v1572_v6, %v561_v45 }
  0x4d   :  { %146 = vmatmul.f32.gmra.mxu0 %v145_v29  ;;  %255 = vmatmul.f32.gmra.mxu1 %v1500_v28 }
  0x4e   :  { %487 = vmatpush.msrb.mxu1 %v1282_v27  ;;  %548 = vmatpush.msrb.mxu2 %v1328_v46  ;;  %v563_v8 = vand.u32 4294901760, %v562_v7 }
  0x4f   :  { %440 = vmatpush.msrb.mxu0 %v1431_v53  ;;  %657 = vmatpush.msrb.mxu3 %v1458_v32  ;;  %v1598_v32 = vsub.f32 %v524_v30, %v1586_v47 }
  0x50   :  { %489 = vmatpush.msrb.mxu1 %v1313_v40  ;;  %550 = vmatpush.msrb.mxu2 %v1341_v51 }
  0x51   :  { %444 = vmatpush.msrb.mxu0 %v1448_v35  ;;  %663 = vmatpush.msrb.mxu3 %v1473_v49  ;;  %v1806_v49 = vld [vmem:[#allocation12_spill] sm:$0xff]  ;;  %v569_v19 = vand.u32 4294901760, %v1598_v32 }
  0x52   :  { %328 = vmatmul.f32.gmra.mxu2 %v142_v38  ;;  %385 = vmatmul.f32.gmra.mxu3 %v143_v50  ;;  %v526_v38 = vmul.f32 %v1521_v62, %v1521_v62 }
  0x53   :  { %491 = vmatpush.msrb.mxu1 %v1328_v46  ;;  %552 = vmatpush.msrb.mxu2 %v1359_v58 }
  0x54   :  { %448 = vmatpush.msrb.mxu0 %v1463_v22  ;;  %669 = vmatpush.msrb.mxu3 %v1486_v16  ;;  %v525_v16 = vmul.f32 %v1482_v1, %v1482_v1 }
  0x55   :  { %493 = vmatpush.msrb.mxu1 %v1341_v51  ;;  %554 = vmatpush.msrb.mxu2 %v1372_v63 }
  0x56   :  { %452 = vmatpush.msrb.mxu0 %v1478_v20  ;;  %675 = vmatpush.msrb.mxu3 %v1495_v52  ;;  %v1807_v52 = vld [vmem:[#allocation13_spill] sm:$0xff]  ;;  %v1615_v42 = vand.u32 4294901760, %v525_v16 }
  0x57   :  { %259 = vmatmul.f32.gmra.mxu1 %v1529_v14  ;;  %454 = vmatmul.f32.vlgmr.msrb.gmra.mxu0 %v1381_v2 }
  0x58   :  { %495 = vmatpush.msrb.mxu1 %v1359_v58  ;;  %556 = vmatpush.msrb.mxu2 %v1391_v12 }
  0x59   :  { %681 = vmatpush.msrb.mxu3 %v1505_v43  ;;  %707 = vmatpush.msra.mxu0 %v1806_v49  ;;  %v570_v43 = vsub.f32 %v1598_v32, %v569_v19 }
  0x5a   :  { %497 = vmatpush.msrb.mxu1 %v1372_v63  ;;  %558 = vmatpush.msrb.mxu2 %v1413_v36 }
  0x5b   :  { %687 = vmatpush.msrb.mxu3 %v1512_v59  ;;  %710 = vmatpush.msra.mxu0 %v1807_v52  ;;  %v1628_v59 = vsub.f32 %v525_v16, %v1615_v42 }
  0x5c   :  { %499 = vmatpush.msrb.mxu1 %v1391_v12  ;;  %564 = vmatmul.f32.vlgmr.msrb.gmra.mxu2 %v563_v8 }
  0x5d   :  { %689 = vmatmul.f32.vlgmr.msrb.gmra.mxu3 %v1561_v60  ;;  %834 = vmatpush.msra.mxu2 %v1270_v23  ;;  %v571_v23 = vand.u32 4294901760, %v570_v43  ;;  %v577_v44 = vand.u32 4294901760, %v1628_v59 }
  0x5e   :  { %713 = vmatpush.msra.mxu0 %v1808_v18  ;;  %501 = vmatpush.msrb.mxu1 %v1413_v36 }
  0x5f   :  { %838 = vmatpush.msra.mxu2 %v1273_v24  ;;  %913 = vmatpush.msra.mxu3 %v1231_v3  ;;  %v1810_v24 = vld [vmem:[#allocation16_spill] sm:$0xff] }
  0x60   :  { %716 = vmatpush.msra.mxu0 %v1809_v37  ;;  %503 = vmatmul.f32.vlgmr.msrb.gmra.mxu1 %v1381_v2  ;;  %v1811_v2 = vld [vmem:[#allocation17_spill] sm:$0xff] }
  0x61   :  { %458 = vmatmul.f32.gmra.mxu0 %v1437_v61  ;;  %775 = vmatpush.msra.mxu1 %v1231_v3  ;;  %v1644_v3 = vand.u32 4294901760, %v526_v38 }
  0x62   :  { %842 = vmatpush.msra.mxu2 %v1276_v25  ;;  %915 = vmatpush.msra.mxu3 %v1233_v4  ;;  %v1812_v25 = vld [vmem:[#allocation18_spill] sm:$0xff] }
  0x63   :  { %719 = vmatpush.msra.mxu0 %v1810_v24  ;;  %777 = vmatpush.msra.mxu1 %v1233_v4  ;;  %v578_v4 = vsub.f32 %v1628_v59, %v577_v44 }
  0x64   :  { %846 = vmatpush.msra.mxu2 %v1280_v26  ;;  %917 = vmatpush.msra.mxu3 %v1235_v5  ;;  %v1658_v26 = vsub.f32 %v526_v38, %v1644_v3 }
  0x65   :  { %722 = vmatpush.msra.mxu0 %v1811_v2  ;;  %572 = vmatmul.f32.gmra.mxu2 %v571_v23 }
  0x66   :  { %693 = vmatmul.f32.gmra.mxu3 %v1586_v47  ;;  %779 = vmatpush.msra.mxu1 %v1235_v5  ;;  %v1813_v5 = vld [vmem:[#allocation19_spill] sm:$0xff] }
  0x67   :  { %850 = vmatpush.msra.mxu2 %v1296_v33  ;;  %919 = vmatpush.msra.mxu3 %v1237_v9  ;;  %v579_v33 = vand.u32 4294901760, %v578_v4 }
  0x68   :  { %725 = vmatpush.msra.mxu0 %v1812_v25  ;;  %781 = vmatpush.msra.mxu1 %v1237_v9  ;;  %v1814_v9 = vld [vmem:[#allocation20_spill] sm:$0xff] }
  0x69   :  { %854 = vmatpush.msra.mxu2 %v1300_v34  ;;  %921 = vmatpush.msra.mxu3 %v1239_v10  ;;  %v585_v34 = vand.u32 4294901760, %v1658_v26 }
  0x6a   :  { %728 = vmatpush.msra.mxu0 %v1813_v5  ;;  %507 = vmatmul.f32.gmra.mxu1 %v1437_v61  ;;  %v1815_v61 = vld [vmem:[#allocation21_spill] sm:$0xff] }
  0x6b   :  { %462 = vmatmul.f32.gmra.mxu0 %v1500_v28  ;;  %783 = vmatpush.msra.mxu1 %v1239_v10  ;;  %v586_v10 = vsub.f32 %v1658_v26, %v585_v34 }
  0x6c   :  { %858 = vmatpush.msra.mxu2 %v1317_v41  ;;  %923 = vmatpush.msra.mxu3 %v1241_v11  ;;  %v1817_v41 = vld [vmem:[#allocation23_spill] sm:$0xff] }
  0x6d   :  { %731 = vmatpush.msra.mxu0 %v1814_v9  ;;  %785 = vmatpush.msra.mxu1 %v1241_v11  ;;  %v1816_v11 = vld [vmem:[#allocation22_spill] sm:$0xff] }
  0x6e   :  { %862 = vmatpush.msra.mxu2 %v1335_v48  ;;  %925 = vmatpush.msra.mxu3 %v1254_v17  ;;  %v1818_v48 = vld [vmem:[#allocation24_spill] sm:$0xff] }
  0x6f   :  { %734 = vmatpush.msra.mxu0 %v1815_v61  ;;  %580 = vmatmul.f32.gmra.mxu2 %v579_v33 }
  0x70   :  { %697 = vmatmul.f32.gmra.mxu3 %v1615_v42  ;;  %787 = vmatpush.msra.mxu1 %v1254_v17  ;;  %v587_v17 = vand.u32 4294901760, %v586_v10 }
  0x71   :  { %866 = vmatpush.msra.mxu2 %v1351_v54  ;;  %927 = vmatpush.msra.mxu3 %v1262_v21 }
  0x72   :  { %737 = vmatpush.msra.mxu0 %v1816_v11  ;;  %789 = vmatpush.msra.mxu1 %v1262_v21  ;;  %v1819_v21 = vld [vmem:[#allocation25_spill] sm:$0xff] }
  0x73   :  { %870 = vmatpush.msra.mxu2 %v1375_v0  ;;  %929 = vmatpush.msra.mxu3 %v1282_v27 }
  0x74   :  { %740 = vmatpush.msra.mxu0 %v1817_v41  ;;  %511 = vmatmul.f32.gmra.mxu1 %v1500_v28 }
  0x75   :  { %466 = vmatmul.f32.gmra.mxu0 %v1529_v14  ;;  %791 = vmatpush.msra.mxu1 %v1282_v27  ;;  %v1820_v27 = vld [vmem:[#allocation26_spill] sm:$0xff] }
  0x76   :  { %874 = vmatpush.msra.mxu2 %v1394_v13  ;;  %931 = vmatpush.msra.mxu3 %v1313_v40 }
  0x77   :  { %743 = vmatpush.msra.mxu0 %v1818_v48  ;;  %793 = vmatpush.msra.mxu1 %v1313_v40 }
  0x78   :  { %878 = vmatpush.msra.mxu2 %v1416_v39  ;;  %933 = vmatpush.msra.mxu3 %v1328_v46 }
  0x79   :  { %746 = vmatpush.msra.mxu0 %v1819_v21  ;;  %588 = vmatmul.f32.gmra.mxu2 %v587_v17 }
  0x7a   :  { %701 = vmatmul.f32.gmra.mxu3 %v1644_v3  ;;  %795 = vmatpush.msra.mxu1 %v1328_v46 }
  0x7b   :  { %882 = vmatpush.msra.mxu2 %v1431_v53  ;;  %935 = vmatpush.msra.mxu3 %v1341_v51 }
  0x7c   :  { %749 = vmatpush.msra.mxu0 %v1434_v55  ;;  %797 = vmatpush.msra.mxu1 %v1341_v51 }
  0x7d   :  { %886 = vmatpush.msra.mxu2 %v1448_v35  ;;  %937 = vmatpush.msra.mxu3 %v1359_v58 }
  0x7e   :  { %752 = vmatpush.msra.mxu0 %v1820_v27  ;;  %515 = vmatmul.f32.gmra.mxu1 %v1529_v14 }
  0x7f   :  { %755 = vmatmul.f32.vlgmr.msra.gmra.mxu0 %v1572_v6  ;;  %799 = vmatpush.msra.mxu1 %v1359_v58 }
  0x80   :  { %890 = vmatpush.msra.mxu2 %v1463_v22  ;;  %939 = vmatpush.msra.mxu3 %v1372_v63 }
  0x81   :  { %801 = vmatpush.msra.mxu1 %v1372_v63 }
  0x82   :  { %894 = vmatpush.msra.mxu2 %v1478_v20  ;;  %941 = vmatpush.msra.mxu3 %v1391_v12 }
  0x83   :  { %803 = vmatpush.msra.mxu1 %v1391_v12  ;;  %896 = vmatmul.f32.vlgmr.msra.gmra.mxu2 %v1561_v60 }
  0x84   :  { %943 = vmatpush.msra.mxu3 %v1413_v36 }
  0x85   :  { %805 = vmatpush.msra.mxu1 %v1413_v36  ;;  %945 = vmatmul.f32.vlgmr.msra.gmra.mxu3 %v1561_v60 }
  0x86   :  { %809 = vmatmul.f32.vlgmr.msra.gmra.mxu1 %v561_v45 }
  0x87   :  { %760 = vmatmul.f32.gmra.mxu0 %v1598_v32 }
  0x8b   :  { %900 = vmatmul.f32.gmra.mxu2 %v1586_v47 }
  0x8d   :  { %949 = vmatmul.f32.gmra.mxu3 %v1586_v47 }
  0x8e   :  { %815 = vmatmul.f32.gmra.mxu1 %v569_v19 }
  0x8f   :  { %765 = vmatmul.f32.gmra.mxu0 %v1628_v59 }
  0x93   :  { %904 = vmatmul.f32.gmra.mxu2 %v1615_v42 }
  0x95   :  { %953 = vmatmul.f32.gmra.mxu3 %v1615_v42 }
  0x96   :  { %821 = vmatmul.f32.gmra.mxu1 %v577_v44 }
  0x97   :  { %770 = vmatmul.f32.gmra.mxu0 %v1658_v26 }
  0x9b   :  { %908 = vmatmul.f32.gmra.mxu2 %v1644_v3 }
  0x9d   :  { %957 = vmatmul.f32.gmra.mxu3 %v1644_v3 }
  0x9e   :  { %827 = vmatmul.f32.gmra.mxu1 %v585_v34 }
  0xad   :  { %v123_v20 = vpop.f32.mrf.mxu0 }
  0xb6   :  { %v131_v22 = vpop.f32.mrf.mxu0  ;;  %v248_v35 = vpop.f32.mrf.mxu1 }
  0xb7   :  { %v314_v40 = vpop.f32.mrf.mxu2  ;;  %v368_v46 = vpop.f32.mrf.mxu3  ;;  %v249_v16 = vadd.f32 %v248_v35, %v123_v20 }
  0xb9   :  { %v315_v8 = vadd.f32 %v314_v40, %v249_v16 }
  0xbb   :  { %v369_v42 = vadd.f32 %v368_v46, %v315_v8 }
  0xc0   :  { %v139_v51 = vpop.f32.mrf.mxu0  ;;  %v252_v54 = vpop.f32.mrf.mxu1 }
  0xc1   :  { %v319_v58 = vpop.f32.mrf.mxu2  ;;  %v374_v63 = vpop.f32.mrf.mxu3  ;;  %v253_v43 = vadd.f32 %v252_v54, %v131_v22 }
  0xc3   :  { %v320_v38 = vadd.f32 %v319_v58, %v253_v43 }
  0xc5   :  { %v375_v25 = vadd.f32 %v374_v63, %v320_v38 }
  0xca   :  { %v147_v0 = vpop.f32.mrf.mxu0  ;;  %v256_v12 = vpop.f32.mrf.mxu1 }
  0xcb   :  { %v324_v13 = vpop.f32.mrf.mxu2  ;;  %v380_v36 = vpop.f32.mrf.mxu3  ;;  %v257_v26 = vadd.f32 %v256_v12, %v139_v51 }
  0xcd   :  { %v325_v41 = vadd.f32 %v324_v13, %v257_v26 }
  0xcf   :  { %v381_v51 = vadd.f32 %v380_v36, %v325_v41 }
  0xd4   :  { %v260_v39 = vpop.f32.mrf.mxu1  ;;  %v455_v53 = vpop.f32.mrf.mxu0 }
  0xd5   :  { %v329_v55 = vpop.f32.mrf.mxu2  ;;  %v1729_v28 = vpop.f32.mrf.mxu3  ;;  %v456_v37 = vadd.f32 %v455_v53, %v369_v42  ;;  %v261_v40 = vadd.f32 %v260_v39, %v147_v0 }
  0xdd   :  { %v504_v14 = vpop.f32.mrf.mxu1 }
  0xde   :  { %v459_v50 = vpop.f32.mrf.mxu0  ;;  %v505_v24 = vadd.f32 %v504_v14, %v456_v37 }
  0xdf   :  { %v565_v15 = vpop.f32.mrf.mxu2  ;;  %v460_v61 = vadd.f32 %v459_v50, %v375_v25 }
  0xe0   :  { %v690_v57 = vpop.f32.mrf.mxu3  ;;  %v1735_v5 = vmul.f32 0.03125, %v505_v24 }
  0xe1   :  { %v691_v18 = vadd.f32 %v690_v57, %v565_v15  ;;  %v330_v15 = vadd.f32 %v329_v55, %v261_v40 }
  0xe2   :  { %v965_v17 = vmul.f32 %v1735_v5, %v1735_v5 }
  0xe3   :  { %v387_v8 = vadd.f32 %v1729_v28, %v330_v15 }
  0xe7   :  { %v508_v60 = vpop.f32.mrf.mxu1 }
  0xe8   :  { %v463_v29 = vpop.f32.mrf.mxu0  ;;  %v573_v6 = vpop.f32.mrf.mxu2  ;;  %v509_v48 = vadd.f32 %v508_v60, %v460_v61 }
  0xe9   :  { %v694_v30 = vpop.f32.mrf.mxu3  ;;  %v464_v14 = vadd.f32 %v463_v29, %v381_v51 }
  0xea   :  { %v695_v9 = vadd.f32 %v694_v30, %v573_v6  ;;  %v1739_v54 = vmul.f32 0.03125, %v509_v48 }
  0xec   :  { %v966_v60 = vmul.f32 %v1739_v54, %v1739_v54 }
  0xf1   :  { %v512_v45 = vpop.f32.mrf.mxu1 }
  0xf2   :  { %v1731_v47 = vpop.f32.mrf.mxu0  ;;  %v581_v7 = vpop.f32.mrf.mxu2  ;;  %v513_v6 = vadd.f32 %v512_v45, %v464_v14 }
  0xf3   :  { %v698_v32 = vpop.f32.mrf.mxu3 }
  0xf4   :  { %v699_v12 = vadd.f32 %v698_v32, %v581_v7 }
  0xfb   :  { %v1733_v49 = vpop.f32.mrf.mxu1 }
  0xfc   :  { %v756_v19 = vpop.f32.mrf.mxu0  ;;  %v589_v52 = vpop.f32.mrf.mxu2 }
  0xfd   :  { %v702_v59 = vpop.f32.mrf.mxu3  ;;  %v757_v23 = vadd.f32 %v756_v19, %v691_v18  ;;  %v1744_v19 = vmul.f32 0.03125, %v513_v6  ;;  %v468_v18 = vadd.f32 %v1731_v47, %v387_v8 }
  0xfe   :  { %v703_v42 = vadd.f32 %v702_v59, %v589_v52 }
  0xff   :  { %v967_v24 = vmul.f32 %v1744_v19, %v1744_v19 }
 0x103   :  { %v810_v44 = vpop.f32.mrf.mxu1 }
 0x104   :  { %v761_v2 = vpop.f32.mrf.mxu0  ;;  %v811_v3 = vadd.f32 %v810_v44, %v757_v23  ;;  %v517_v44 = vadd.f32 %v1733_v49, %v468_v18 }
 0x105   :  { %v762_v11 = vadd.f32 %v761_v2, %v695_v9 }
 0x106   :  { %v897_v4 = vpop.f32.mrf.mxu2  ;;  %v1750_v26 = vmul.f32 0.03125, %v517_v44 }
 0x107   :  { %v898_v33 = vadd.f32 %v897_v4, %v811_v3 }
 0x108   :  { %v946_v34 = vpop.f32.mrf.mxu3  ;;  %v968_v48 = vmul.f32 %v1750_v26, %v1750_v26 }
 0x109   :  { %v947_v10 = vadd.f32 %v946_v34, %v898_v33 }
 0x10b   :  { %v961_v21 = vmul.f32 0.03125, %v947_v10  ;;  %v816_v27 = vpop.f32.mrf.mxu1 }
 0x10c   :  { %v817_v20 = vadd.f32 %v816_v27, %v762_v11  ;;  %v766_v35 = vpop.f32.mrf.mxu0 }
 0x10d   :  { %v969_v22 = vsub.f32 %v961_v21, %v965_v17  ;;  %v767_v57 = vadd.f32 %v766_v35, %v699_v12  ;;  %v1021_v17 = vsub.f32 %v1353_v56, %v1735_v5  ;;  %v1073_v21 = vld [vmem:[#allocation5] ss:$0 sm:$0xff] }
 0x10e   :  { %v901_v46 = vpop.f32.mrf.mxu2 }
 0x10f   :  { %v973_v58 = vmax.f32 %v969_v22, 0.0  ;;  %v902_v63 = vadd.f32 %v901_v46, %v817_v20  ;;  %v1074_v46 = vld [vmem:[%s1773_s2] ss:$0 sm:$0xff]  ;;  %s1190_s2 = smov [#allocation8]  }
 0x110   :  { %v950_v53 = vpop.f32.mrf.mxu3  ;;  %s1051_s5 = sshll.u32 %s1190_s2, 4  ;;  %s1052_s5 = int_to_ptr.vmem [resolvable:$true] %s1051_s5 }
 0x111   :  { %v977_v13 = vadd.f32 1e-05, %v973_v58  ;;  %v951_v50 = vadd.f32 %v950_v53, %v902_v63 }
 0x113   :  { %1075 = vrsqrt.f32 %v977_v13  ;;  %v962_v30 = vmul.f32 0.03125, %v951_v50  ;;  %v822_v0 = vpop.f32.mrf.mxu1  ;;  %vm987_vm1 = vweird.f32 %v977_v13  ;;  %v1022_v50 = vsub.f32 %v1407_v31, %v1739_v54 }
 0x114   :  { %v823_v39 = vadd.f32 %v822_v0, %v767_v57  ;;  %v771_v29 = vpop.f32.mrf.mxu0 }
 0x115   :  { %v970_v36 = vsub.f32 %v962_v30, %v966_v60  ;;  %v772_v38 = vadd.f32 %v771_v29, %v703_v42 }
 0x116   :  { %v905_v16 = vpop.f32.mrf.mxu2 }
 0x117   :  { %v974_v7 = vmax.f32 %v970_v36, 0.0  ;;  %v906_v32 = vadd.f32 %v905_v16, %v823_v39 }
 0x118   :  { %v954_v55 = vpop.f32.mrf.mxu3 }
 0x119   :  { %v1076_v43 = vpop.eup %1075  ;;  %v978_v37 = vadd.f32 1e-05, %v974_v7  ;;  %v955_v45 = vadd.f32 %v954_v55, %v906_v32  ;;  %v1023_v7 = vsub.f32 %v1482_v1, %v1744_v19 }
 0x11a   :  { %v982_v23 = vmul.f32 %v1076_v43, %v977_v13  ;;  %vm988_vm0 = vweird.f32 %v1076_v43 }
 0x11b   :  { %1077 = vrsqrt.f32 %v978_v37  ;;  %v963_v28 = vmul.f32 0.03125, %v955_v45  ;;  %v828_v2 = vpop.f32.mrf.mxu1  ;;  %vm989_vm2 = vmor %vm987_vm1, %vm988_vm0  ;;  %vm997_vm4 = vweird.f32 %v978_v37 }
 0x11c   :  { %v983_v3 = vmul.f32 %v1076_v43, %v982_v23  ;;  %v829_v4 = vadd.f32 %v828_v2, %v772_v38 }
 0x11d   :  { %v971_v25 = vsub.f32 %v963_v28, %v967_v24 }
 0x11e   :  { %v984_v52 = vmul.f32 0.5, %v983_v3  ;;  %v909_v59 = vpop.f32.mrf.mxu2 }
 0x11f   :  { %v975_v47 = vmax.f32 %v971_v25, 0.0  ;;  %v910_v33 = vadd.f32 %v909_v59, %v829_v4 }
 0x120   :  { %v985_v9 = vsub.f32 1.5, %v984_v52  ;;  %v958_v34 = vpop.f32.mrf.mxu3 }
 0x121   :  { %v1078_v61 = vpop.eup %1077  ;;  %v979_v10 = vadd.f32 1e-05, %v975_v47  ;;  %v959_v11 = vadd.f32 %v958_v34, %v910_v33 }
 0x122   :  { %v986_v41 = vmul.f32 %v1076_v43, %v985_v9  ;;  %v992_v49 = vmul.f32 %v1078_v61, %v978_v37  ;;  %vm998_vm3 = vweird.f32 %v1078_v61  ;;  %v1024_v37 = vsub.f32 %v1521_v62, %v1750_v26 }
 0x123   :  { %1079 = vrsqrt.f32 %v979_v10  ;;  %v964_v27 = vmul.f32 0.03125, %v959_v11  ;;  %vm999_vm5 = vmor %vm997_vm4, %vm998_vm3  ;;  %vm1007_vm7 = vweird.f32 %v979_v10 }
 0x124   :  { %v990_v20 = vsel %vm989_vm2, %v1076_v43, %v986_v41  ;;  %v993_v22 = vmul.f32 %v1078_v61, %v992_v49 }
 0x125   :  { %v1025_v35 = vmul.f32 %v1021_v17, %v990_v20  ;;  %v972_v40 = vsub.f32 %v964_v27, %v968_v48 }
 0x126   :  { %v994_v51 = vmul.f32 0.5, %v993_v22 }
 0x127   :  { %v1032_v58 = vmul.f32 %v1073_v21, %v1025_v35  ;;  %v976_v63 = vmax.f32 %v972_v40, 0.0 }
 0x128   :  { %v995_v12 = vsub.f32 1.5, %v994_v51 }
 0x129   :  { %v1080_v56 = vpop.eup %1079  ;;  %v980_v5 = vadd.f32 1e-05, %v976_v63  ;;  %v1039_v53 = vadd.f32 %v1074_v46, %v1032_v58 }
 0x12a   :  { %v996_v14 = vmul.f32 %v1078_v61, %v995_v12  ;;  %v1002_v13 = vmul.f32 %v1080_v56, %v979_v10  ;;  %vm1008_vm6 = vweird.f32 %v1080_v56 }
 0x12b   :  { %1081 = vrsqrt.f32 %v980_v5  ;;  %1043 = vst [vmem:[#allocation8] sm:$0xff] %v1039_v53  ;;  %vm1009_vm8 = vmor %vm1007_vm7, %vm1008_vm6  ;;  %vm1017_vm10 = vweird.f32 %v980_v5 }
 0x12c   :  { %v1000_v15 = vsel %vm999_vm5, %v1078_v61, %v996_v14  ;;  %v1003_v57 = vmul.f32 %v1080_v56, %v1002_v13 }
 0x12d   :  { %v1026_v60 = vmul.f32 %v1022_v50, %v1000_v15 }
 0x12e   :  { %v1004_v6 = vmul.f32 0.5, %v1003_v57 }
 0x12f   :  { %v1033_v30 = vmul.f32 %v1073_v21, %v1026_v60 }
 0x130   :  { %v1005_v0 = vsub.f32 1.5, %v1004_v6 }
 0x131   :  { %v1082_v39 = vpop.eup %1081  ;;  %v1040_v36 = vadd.f32 %v1074_v46, %v1033_v30 }
 0x132   :  { %v1006_v16 = vmul.f32 %v1080_v56, %v1005_v0  ;;  %v1012_v8 = vmul.f32 %v1082_v39, %v980_v5  ;;  %vm1018_vm9 = vweird.f32 %v1082_v39 }
 0x133   :  { %1044 = vst [vmem:[#allocation8 + $0x8] sm:$0xff] %v1040_v36  ;;  %vm1019_vm11 = vmor %vm1017_vm10, %vm1018_vm9 }
 0x134   :  { %v1010_v31 = vsel %vm1009_vm8, %v1080_v56, %v1006_v16  ;;  %v1013_v54 = vmul.f32 %v1082_v39, %v1012_v8 }
 0x135   :  { %v1027_v29 = vmul.f32 %v1023_v7, %v1010_v31 }
 0x136   :  { %v1014_v32 = vmul.f32 0.5, %v1013_v54 }
 0x137   :  { %v1034_v42 = vmul.f32 %v1073_v21, %v1027_v29 }
 0x138   :  { %v1015_v55 = vsub.f32 1.5, %v1014_v32 }
 0x139   :  { %v1041_v43 = vadd.f32 %v1074_v46, %v1034_v42 }
 0x13a   :  { %v1016_v18 = vmul.f32 %v1082_v39, %v1015_v55 }
 0x13b   :  { %1045 = vst [vmem:[#allocation8 + $0x10] sm:$0xff] %v1041_v43 }
 0x13c   :  { %v1020_v45 = vsel %vm1019_vm11, %v1082_v39, %v1016_v18 }
 0x13d   :  { %v1028_v23 = vmul.f32 %v1024_v37, %v1020_v45 }
 0x13f   :  { %v1035_v1 = vmul.f32 %v1073_v21, %v1028_v23 }
 0x141   :  { %v1042_v19 = vadd.f32 %v1074_v46, %v1035_v1 }
 0x143   :  { %1046 = vst [vmem:[#allocation8 + $0x18] sm:$0xff] %v1042_v19 }
 0x144   :  { %1059 = dma.vmem_to_hbm [thread:$0]  %s1052_s5, 512, %s1054_s8, [#allocation4], %s1187_s25, %s1187_s25, %s1188_s26  }
 0x145   :  { %1183 = dma.done.wait [#allocation4], 512  }
 0x146   :  { %1184 = vsyncadd [#allocation4], 4294966784 }
 0x147   :  { %1064 = vsyncpa [#allocation3], 1 }
 0x148   :  { %1065 = vsyncpa [#allocation6], 1 }
 0x149   :  { %1066 = vsyncpa [#allocation4], 1 }

</bundles_post_ra>
